<compile_context>
chip_gen: v6e
topology: v6e:2x2x1
jax: 0.10.0
libtpu: 0.0.40
codegen_flags: <defaults>
</compile_context>

<pallas_src>
import math

import jax
import jax.numpy as jnp
from jax.experimental import pallas as pl
from jax.experimental.pallas import tpu as pltpu

_LANE = 128
_BLOCK_BYTES = 2 << 20  # ~2 MiB per x/out block (double-buffered -> ~8 MiB total)


def _drop_path_kernel(scale_ref, x_ref, o_ref):
    # scale_ref: VMEM (b_tile, 1) float32 -- per-sample scale (0.0 or 1/keep_prob)
    # x_ref / o_ref: VMEM (b_tile, n_tile) lane-dense tiles of the flattened input
    o_ref[...] = (x_ref[...] * scale_ref[...]).astype(o_ref.dtype)


def drop_path_pallas(x, drop_prob: float = 0.0, training: bool = False, *, key=None):
    """Pallas implementation of DropPath.forward for N-D inputs (batch first)."""
    if drop_prob == 0.0 or not training:
        return x
    if key is None:
        raise ValueError(
            "drop_path_pallas requires an explicit PRNG key when training with "
            "drop_prob > 0 (no silent PRNGKey(0) fallback)."
        )

    keep_prob = 1.0 - float(drop_prob)
    B = x.shape[0]
    N = int(math.prod(x.shape[1:])) if x.ndim > 1 else 1

    # Per-sample Bernoulli mask + rescale, computed in float32.
    u = jax.random.uniform(key, (B,), dtype=jnp.float32)
    random_tensor = jnp.floor(keep_prob + u)                 # 0.0 or 1.0 per sample
    scale = (random_tensor / keep_prob).reshape(B, 1)        # f32: 0.0 or 1/keep_prob

    # Flatten each sample: lane-dense last dim instead of narrow W.
    x2 = x.reshape(B, N)

    itemsize = jnp.dtype(x.dtype).itemsize
    # Sublane tile matched to dtype packing (8 rows f32, 16 bf16, 32 int8),
    # or the full batch extent when B is small.
    sub = 8 * max(1, 4 // itemsize)
    b_tile = B if B <= sub else sub

    if N <= _LANE:
        n_tile = N                                            # full extent (legal even if <128)
    else:
        # Cap each x/out block at ~2 MiB; keep n_tile a multiple of 128.
        max_lanes = max(_LANE, (_BLOCK_BYTES // (b_tile * itemsize)) // _LANE * _LANE)
        n_round = pl.cdiv(N, _LANE) * _LANE
        n_tile = min(n_round, max_lanes)

    grid = (pl.cdiv(B, b_tile), pl.cdiv(N, n_tile))

    out = pl.pallas_call(
        _drop_path_kernel,
        out_shape=jax.ShapeDtypeStruct((B, N), x.dtype),
        grid=grid,
        in_specs=[
            # per-sample scale as a tiny VMEM column block, broadcast in-kernel
            pl.BlockSpec((b_tile, 1), lambda i, j: (i, 0)),
            # lane-dense data tile
            pl.BlockSpec((b_tile, n_tile), lambda i, j: (i, j)),
        ],
        out_specs=pl.BlockSpec((b_tile, n_tile), lambda i, j: (i, j)),
        compiler_params=pltpu.CompilerParams(
            dimension_semantics=("parallel", "parallel"),
        ),
    )(scale, x2)

    return out.reshape(x.shape)


class DropPath:
    """Mirror of the PyTorch DropPath module (stateless: no parameters)."""

    def __init__(self, drop_prob=None):
        self.drop_prob = drop_prob if drop_prob is not None else 0.0
        self.training = True

    def __call__(self, x, key=None):
        return drop_path_pallas(x, self.drop_prob, self.training, key=key)


if __name__ == "__main__":
    key = jax.random.PRNGKey(0)
    kx, kdrop = jax.random.split(key)

    B, C, H, W = 2, 4, 16, 16
    x = jax.random.normal(kx, (B, C, H, W), dtype=jnp.float32)

    drop_prob = 0.3
    keep_prob = 1.0 - drop_prob

    module = DropPath(drop_prob)
    module.training = True

    out = jax.block_until_ready(module(x, key=kdrop))

    # Pure-JAX reference with the identical (f32) mask.
    u = jax.random.uniform(kdrop, (B,), dtype=jnp.float32)
    rt = jnp.floor(keep_prob + u).reshape(B, 1, 1, 1)
    ref = (x / keep_prob) * rt
    assert out.shape == x.shape and out.dtype == x.dtype
    assert jnp.allclose(out, ref, atol=1e-5, rtol=1e-5)

    # bf16 input: mask/scale stay f32, only the final cast is bf16.
    xb = x.astype(jnp.bfloat16)
    outb = jax.block_until_ready(module(xb, key=kdrop))
    refb = ((xb.astype(jnp.float32) / keep_prob) * rt).astype(jnp.bfloat16)
    assert outb.shape == xb.shape and outb.dtype == jnp.bfloat16
    assert jnp.allclose(
        outb.astype(jnp.float32), refb.astype(jnp.float32), atol=1e-2, rtol=1e-2
    )

    # Larger batch exercises the multi-tile batch path (b_tile = 8 sublanes).
    B2 = 10
    x2 = jax.random.normal(kx, (B2, C, H, W), dtype=jnp.float32)
    out2 = jax.block_until_ready(drop_path_pallas(x2, drop_prob, True, key=kdrop))
    u2 = jax.random.uniform(kdrop, (B2,), dtype=jnp.float32)
    rt2 = jnp.floor(keep_prob + u2).reshape(B2, 1, 1, 1)
    ref2 = (x2 / keep_prob) * rt2
    assert jnp.allclose(out2, ref2, atol=1e-5, rtol=1e-5)

    # Eval-mode / drop_prob=0 path is identity (no key required).
    module.training = False
    out_eval = jax.block_until_ready(module(x))
    assert jnp.array_equal(out_eval, x)

    print("KERNEL_OK")
</pallas_src>

<mosaic_0001>
module attributes {stable_mosaic.version = 11 : i64} {
  func.func @_drop_path_kernel(%arg0: i32, %arg1: i32, %arg2: memref<2x1xf32, #tpu.memory_space<vmem>>, %arg3: memref<2x1024xf32, #tpu.memory_space<vmem>>, %arg4: memref<2x1024xf32, #tpu.memory_space<vmem>>) attributes {dimension_semantics = [#tpu.dimension_semantics<parallel>, #tpu.dimension_semantics<parallel>], iteration_bounds = array<i64: 1, 1>, scalar_prefetch = 0 : i64, scratch_operands = 0 : i64, tpu.core_type = #tpu.core_type<tc>, window_params = [{transform_indices = @transform_0, window_bounds = array<i64: 2, 1>}, {transform_indices = @transform_1, window_bounds = array<i64: 2, 1024>}, {transform_indices = @transform_2, window_bounds = array<i64: 2, 1024>}]} {
    %c0 = arith.constant 0 : index
    %c0_0 = arith.constant 0 : index
    %0 = vector.load %arg3[%c0, %c0_0] : memref<2x1024xf32, #tpu.memory_space<vmem>>, vector<2x1024xf32>
    %c0_1 = arith.constant 0 : index
    %c0_2 = arith.constant 0 : index
    %1 = vector.load %arg2[%c0_1, %c0_2] : memref<2x1xf32, #tpu.memory_space<vmem>>, vector<2x1xf32>
    %2 = vector.broadcast %1 : vector<2x1xf32> to vector<2x1024xf32>
    %3 = arith.mulf %0, %2 : vector<2x1024xf32>
    %c0_3 = arith.constant 0 : index
    %c0_4 = arith.constant 0 : index
    %4 = vector.load %arg4[%c0_3, %c0_4] : memref<2x1024xf32, #tpu.memory_space<vmem>>, vector<2x1024xf32>
    tpu.vector_store %arg4[%c0_3, %c0_4], %3 {strides = array<i32>} : memref<2x1024xf32, #tpu.memory_space<vmem>>, vector<2x1024xf32>,
    return
  }
  func.func @transform_0(%arg0: i32, %arg1: i32) -> (i32, i32) {
    %c0_i32 = arith.constant 0 : i32
    %c0_i32_0 = arith.constant 0 : i32
    return %arg0, %c0_i32 : i32, i32
  }
  func.func @transform_1(%arg0: i32, %arg1: i32) -> (i32, i32) {
    %c0_i32 = arith.constant 0 : i32
    return %arg0, %arg1 : i32, i32
  }
  func.func @transform_2(%arg0: i32, %arg1: i32) -> (i32, i32) {
    %c0_i32 = arith.constant 0 : i32
    return %arg0, %arg1 : i32, i32
  }
}

</mosaic_0001>

<bundles_post_ra>
// kernel: tpu_custom_call.1
= control target key start
LH: loop header
LB: loop body
LE: loop exit
PB: predicated region body
PF: predicated region fallthrough
CT: control target
= control target key end

     0   :  { %7 = vsyncpa [#allocation3], 0  ;;  %s135_s0 = inlined_call_operand.vmem [shape: f32[2,1], index: 0, kind: input, shape index: {}]   ;;  %s136_s1 = inlined_call_operand.hbm [shape: f32[2,1024], index: 1, kind: input, shape index: {}]   ;;  %s137_s2 = inlined_call_operand.hbm [shape: f32[2,1024], index: 2, kind: output, shape index: {}]  }
   0x1   :  { %8 = vsyncpa [#allocation4], 0  ;;  %s107_s9 = smov [#allocation2]  }
   0x2   :  { %s17_s10 = sshll.u32 %s107_s9, 4  ;;  %s18_s10 = int_to_ptr.vmem [resolvable:$true] %s17_s10 }
   0x3   :  { %s71_s11 = scalar_lea.vmem %s18_s10, 256  ;;  %p76_p1 = scmp.lt.s32.totalorder %s18_s10, %s18_s10 }
   0x4   :  { %p72_p0 = scmp.ne.s32.totalorder %s18_s10, %s71_s11  ;;  %p77_p2 = scmp.lt.s32.totalorder %s71_s11, %s71_s11 }
   0x6   :  { %p78_p3 = por %p77_p2, %p76_p1 }
   0x8   :  { %p79_p4 = pnand %p78_p3, %p72_p0 }
   0xa   :  { %82 = shalt.err (!%p79_p4)
}
   0xb   :  { %20 = dma.hbm_to_vmem [thread:$0]  %s136_s1, 256, %s18_s10, [#allocation3]  }
   0xc   :  { %103 = dma.done.wait [#allocation3], 256  }
   0xd   :  { %104 = vsyncadd [#allocation3], 4294967040  ;;  %v108_v0 = vmov 0   ;;  %v26_v1 = vld [vmem:[%s135_s0] sm:$0x3]  ;;  %v34_v4 = vlaneseq  ;;  %v25_v10 = vld [vmem:[#allocation2 + $0x8] sm:$0xff] }
   0xe   :  { %62 = vset.pattern.permute.xlu0 %v108_v0  ;;  %v109_v2 = vmov 269488144   ;;  %v24_v9 = vld [vmem:[#allocation2] sm:$0xff]  ;;  %s110_s16 = smov [#allocation5]  }
   0xf   :  { %29 = vperm.xlu0 %62, %v26_v1   ;;  %v32_v3 = vunpack.c.l.s4 %v109_v2  ;;  %v35_v6 = vshrl.u32 %v34_v4, 7  ;;  %s49_s1 = sshll.u32 %s110_s16, 4  ;;  %s50_s1 = int_to_ptr.vmem [resolvable:$true] %s49_s1 }
  0x10   :  { %s83_s17 = scalar_lea.vmem %s50_s1, 256  ;;  %p88_p6 = scmp.lt.s32.totalorder %s50_s1, %s50_s1 }
  0x11   :  { %v33_v5 = vunpack.c.0.s8 %v32_v3  ;;  %p84_p5 = scmp.ne.s32.totalorder %s50_s1, %s83_s17  ;;  %p89_p7 = scmp.lt.s32.totalorder %s83_s17, %s83_s17 }
  0x13   :  { %v36_v7 = vsub.s32 %v33_v5, %v35_v6  ;;  %p90_p8 = por %p89_p7, %p88_p6 }
  0x15   :  { %p91_p9 = pnand %p90_p8, %p84_p5 }
  0x8a   :  { %v30_v8 = vpop.permute.xlu0 %29 }
  0x8b   :  { %v37_v11 = vrot.slane %v30_v8, %v36_v7 }
  0x8d   :  { %v39_v12 = vmul.f32 %v37_v11, %v24_v9  ;;  %v40_v13 = vmul.f32 %v37_v11, %v25_v10 }
  0x8f   :  { %41 = vst [vmem:[#allocation5] sm:$0xff] %v39_v12  ;;  %42 = vst [vmem:[#allocation5 + $0x8] sm:$0xff] %v40_v13 }
  0x90   :  { %94 = shalt.err (!%p91_p9)
}
  0x91   :  { %52 = dma.vmem_to_hbm [thread:$0]  %s50_s1, 256, %s137_s2, [#allocation4]  }
  0x92   :  { %105 = dma.done.wait [#allocation4], 256  }
  0x93   :  { %106 = vsyncadd [#allocation4], 4294967040 }
  0x94   :  { %56 = vsyncpa [#allocation3], 1 }
  0x95   :  { %57 = vsyncpa [#allocation4], 1 }

</bundles_post_ra>
